<compile_context>
chip_gen: v7x
topology: tpu7x:2x2x1
jax: 0.10.0
libtpu: 0.0.40
codegen_flags: <defaults>
</compile_context>

<pallas_src>
import jax
import jax.numpy as jnp
import numpy as np
from jax.experimental import pallas as pl
from jax.experimental.pallas import tpu as pltpu


# ----------------------------------------------------------------------------
# Fused kernel: for each time step t, run all LSTM layers then the Linear head.
# PyTorch gate order along the 4H axis: i, f, g, o.
# ----------------------------------------------------------------------------
def _make_fused_kernel(num_layers):
    def kernel(*refs):
        x_ref = refs[0]                                   # (T, B, E)  f32, resident
        layer_w = refs[1:1 + num_layers]                  # (E_l + H, 4H) bf16 each
        layer_b = refs[1 + num_layers:1 + 2 * num_layers]  # (1, 4H) f32 each
        wl_ref = refs[1 + 2 * num_layers]                 # (H, V) bf16
        bl_ref = refs[2 + 2 * num_layers]                 # (1, V) f32
        out_ref = refs[3 + 2 * num_layers]                # (T, B, V) f32, resident
        scratch = refs[4 + 2 * num_layers:]
        h_refs = scratch[:num_layers]                     # (B, H) f32 each
        c_refs = scratch[num_layers:]                     # (B, H) f32 each

        t = pl.program_id(0)

        @pl.when(t == 0)
        def _():
            for l in range(num_layers):
                h_refs[l][...] = jnp.zeros_like(h_refs[l])
                c_refs[l][...] = jnp.zeros_like(c_refs[l])

        H = h_refs[0].shape[1]
        x = x_ref[t]                                      # (B, E) f32

        for l in range(num_layers):
            h = h_refs[l][...]
            c = c_refs[l][...]
            # Fused input/recurrent matmul: one MXU push on the stacked weight.
            xh = jnp.concatenate([x, h], axis=1).astype(jnp.bfloat16)   # (B, E_l+H)
            gates = (
                jnp.dot(xh, layer_w[l][...], preferred_element_type=jnp.float32)
                + layer_b[l][...]                          # (1, 4H) broadcasts over B
            )                                              # (B, 4H) f32
            # Two full-width transcendental passes (EUP), then slice gate slabs.
            sig = jax.nn.sigmoid(gates)
            tah = jnp.tanh(gates)
            i_g = sig[:, 0 * H:1 * H]
            f_g = sig[:, 1 * H:2 * H]
            g_g = tah[:, 2 * H:3 * H]
            o_g = sig[:, 3 * H:4 * H]

            c_new = f_g * c + i_g * g_g
            h_new = o_g * jnp.tanh(c_new)
            c_refs[l][...] = c_new
            h_refs[l][...] = h_new
            x = h_new                                      # feeds the next layer

        # Final Linear head fused into the same grid step (no extra launch, no
        # (T,B,H) HBM round trip of the hidden sequence).
        logits = (
            jnp.dot(x.astype(jnp.bfloat16), wl_ref[...],
                    preferred_element_type=jnp.float32)
            + bl_ref[...]
        )                                                  # (B, V)
        out_ref[t] = logits.astype(out_ref.dtype)

    return kernel


def fused_lstm_linear_pallas(x_tbe, layers, lin_w_t, lin_b):
    """x_tbe: (T, B, E) f32 time-major embedded sequence.
    layers: list of {"w": (E_l + H, 4H) bf16, "b": (1, 4H) f32}.
    lin_w_t: (H, V) bf16; lin_b: (1, V) f32.
    Returns logits (T, B, V) f32."""
    T, B, E = x_tbe.shape
    num_layers = len(layers)
    H = layers[0]["w"].shape[1] // 4
    V = lin_w_t.shape[1]

    in_specs = [pl.BlockSpec((T, B, E), lambda t: (0, 0, 0))]          # resident input
    for layer in layers:
        k_in = layer["w"].shape[0]
        in_specs.append(pl.BlockSpec((k_in, 4 * H), lambda t: (0, 0)))  # constant weight
    for _ in layers:
        in_specs.append(pl.BlockSpec((1, 4 * H), lambda t: (0, 0)))     # constant bias
    in_specs.append(pl.BlockSpec((H, V), lambda t: (0, 0)))             # Linear weight
    in_specs.append(pl.BlockSpec((1, V), lambda t: (0, 0)))             # Linear bias

    args = ([x_tbe]
            + [l["w"] for l in layers]
            + [l["b"] for l in layers]
            + [lin_w_t, lin_b])

    return pl.pallas_call(
        _make_fused_kernel(num_layers),
        out_shape=jax.ShapeDtypeStruct((T, B, V), jnp.float32),
        grid_spec=pltpu.PrefetchScalarGridSpec(
            num_scalar_prefetch=0,
            grid=(T,),
            in_specs=in_specs,
            # Resident output: constant block index over T -> single HBM writeback.
            out_specs=pl.BlockSpec((T, B, V), lambda t: (0, 0, 0)),
            scratch_shapes=(
                [pltpu.VMEM((B, H), jnp.float32) for _ in range(num_layers)]   # h carries
                + [pltpu.VMEM((B, H), jnp.float32) for _ in range(num_layers)]  # c carries
            ),
        ),
        # Sequential recurrence + VMEM-carried state: the T axis MUST stay arbitrary.
        compiler_params=pltpu.CompilerParams(
            dimension_semantics=("arbitrary",)),
    )(*args)


# ----------------------------------------------------------------------------
# Full forward: Embedding (JAX gather, time-major) -> fused LSTM+Linear kernel.
# ----------------------------------------------------------------------------
def lstm_enhanced_forward(tokens, params):
    # Gather directly in time-major layout: removes the input transpose.
    emb = jnp.take(params["embedding"], tokens.T, axis=0)               # (T, B, E)
    out_tbv = fused_lstm_linear_pallas(
        emb.astype(jnp.float32), params["lstm_layers"],
        params["lin_w_t"], params["lin_b"])                             # (T, B, V)
    # Tiny final layout fix to PyTorch's batch_first (B, T, V); kept in the wrapper
    # so all in-kernel stores stay on the well-supported dynamic leading-dim path.
    return jnp.transpose(out_tbv, (1, 0, 2))


# ----------------------------------------------------------------------------
# Pure-JAX f32 reference (same math, same stacked-weight values) for correctness.
# ----------------------------------------------------------------------------
def lstm_enhanced_reference(tokens, params):
    emb = jnp.take(params["embedding"], tokens.T, axis=0)               # (T, B, E)
    x = emb.astype(jnp.float32)
    B = x.shape[1]
    for layer in params["lstm_layers"]:
        w = layer["w"].astype(jnp.float32)                              # (E_l+H, 4H)
        b = layer["b"]
        H = w.shape[1] // 4

        def step(carry, x_t, w=w, b=b, H=H):
            h, c = carry
            gates = jnp.concatenate([x_t, h], axis=1) @ w + b
            i_g = jax.nn.sigmoid(gates[:, 0 * H:1 * H])
            f_g = jax.nn.sigmoid(gates[:, 1 * H:2 * H])
            g_g = jnp.tanh(gates[:, 2 * H:3 * H])
            o_g = jax.nn.sigmoid(gates[:, 3 * H:4 * H])
            c_new = f_g * c + i_g * g_g
            h_new = o_g * jnp.tanh(c_new)
            return (h_new, c_new), h_new

        init = (jnp.zeros((B, H), jnp.float32), jnp.zeros((B, H), jnp.float32))
        _, x = jax.lax.scan(step, init, x)
    out = x @ params["lin_w_t"].astype(jnp.float32) + params["lin_b"]
    return jnp.transpose(out, (1, 0, 2))                                # (B, T, V)


# ----------------------------------------------------------------------------
# Deterministic parameter construction (PyTorch-equivalent shapes).
# ----------------------------------------------------------------------------
def make_params(key, words_num, embedding_dim, hidden_size, num_layers):
    keys = jax.random.split(key, 3 + 4 * num_layers)
    params = {}
    params["embedding"] = 0.1 * jax.random.normal(
        keys[0], (words_num, embedding_dim), jnp.float32)

    layers = []
    in_dim = embedding_dim
    for l in range(num_layers):
        k0, k1, k2, k3 = keys[3 + 4 * l: 3 + 4 * (l + 1)]
        w_ih = 0.1 * jax.random.normal(k0, (4 * hidden_size, in_dim), jnp.float32)
        w_hh = 0.1 * jax.random.normal(k1, (4 * hidden_size, hidden_size), jnp.float32)
        b_ih = 0.1 * jax.random.normal(k2, (4 * hidden_size,), jnp.float32)
        b_hh = 0.1 * jax.random.normal(k3, (4 * hidden_size,), jnp.float32)
        # Stacked [W_ih; W_hh]^T -> (in_dim + H, 4H), bf16 (MXU-native);
        # biases pre-summed in f32.
        w_stacked = jnp.concatenate([w_ih.T, w_hh.T], axis=0).astype(jnp.bfloat16)
        layers.append({
            "w": w_stacked,
            "b": (b_ih + b_hh).reshape(1, 4 * hidden_size),
        })
        in_dim = hidden_size
    params["lstm_layers"] = layers

    lin_w = 0.1 * jax.random.normal(keys[1], (words_num, hidden_size), jnp.float32)
    lin_b = 0.1 * jax.random.normal(keys[2], (words_num,), jnp.float32)
    params["lin_w_t"] = lin_w.T.astype(jnp.bfloat16)                    # (H, V)
    params["lin_b"] = lin_b.reshape(1, words_num)                       # (1, V)
    return params


if __name__ == "__main__":
    WORDS_NUM = 64
    EMBEDDING_DIM = 32
    HIDDEN_SIZE = 32
    NUM_LAYERS = 2
    BATCH = 2
    SEQ = 8

    key = jax.random.PRNGKey(0)
    k_tok, k_par = jax.random.split(key)
    tokens = jax.random.randint(k_tok, (BATCH, SEQ), 0, WORDS_NUM, dtype=jnp.int32)
    params = make_params(k_par, WORDS_NUM, EMBEDDING_DIM, HIDDEN_SIZE, NUM_LAYERS)

    out = jax.jit(lstm_enhanced_forward)(tokens, params)
    out = jax.block_until_ready(out)
    assert out.shape == (BATCH, SEQ, WORDS_NUM), out.shape

    ref = jax.block_until_ready(lstm_enhanced_reference(tokens, params))
    # bf16 matmul operands (f32 accumulation) vs. f32 reference -> loose-but-tight tol.
    np.testing.assert_allclose(np.asarray(out), np.asarray(ref), rtol=1e-2, atol=1e-2)

    print("KERNEL_OK")
</pallas_src>

<mosaic_0001>
module attributes {stable_mosaic.version = 11 : i64} {
  func.func @kernel(%arg0: i32, %arg1: memref<8x2x32xf32, #tpu.memory_space<vmem>>, %arg2: memref<64x128xbf16, #tpu.memory_space<vmem>>, %arg3: memref<64x128xbf16, #tpu.memory_space<vmem>>, %arg4: memref<1x128xf32, #tpu.memory_space<vmem>>, %arg5: memref<1x128xf32, #tpu.memory_space<vmem>>, %arg6: memref<32x64xbf16, #tpu.memory_space<vmem>>, %arg7: memref<1x64xf32, #tpu.memory_space<vmem>>, %arg8: memref<8x2x64xf32, #tpu.memory_space<vmem>>, %arg9: memref<2x32xf32, #tpu.memory_space<vmem>>, %arg10: memref<2x32xf32, #tpu.memory_space<vmem>>, %arg11: memref<2x32xf32, #tpu.memory_space<vmem>>, %arg12: memref<2x32xf32, #tpu.memory_space<vmem>>) attributes {dimension_semantics = [#tpu.dimension_semantics<arbitrary>], iteration_bounds = array<i64: 8>, scalar_prefetch = 0 : i64, scratch_operands = 4 : i64, tpu.core_type = #tpu.core_type<tc>, window_params = [{pipeline_mode = #tpu.pipeline_mode<synchronous>, transform_indices = @transform_0, window_bounds = array<i64: 8, 2, 32>}, {pipeline_mode = #tpu.pipeline_mode<synchronous>, transform_indices = @transform_1, window_bounds = array<i64: 64, 128>}, {pipeline_mode = #tpu.pipeline_mode<synchronous>, transform_indices = @transform_2, window_bounds = array<i64: 64, 128>}, {pipeline_mode = #tpu.pipeline_mode<synchronous>, transform_indices = @transform_3, window_bounds = array<i64: 1, 128>}, {pipeline_mode = #tpu.pipeline_mode<synchronous>, transform_indices = @transform_4, window_bounds = array<i64: 1, 128>}, {pipeline_mode = #tpu.pipeline_mode<synchronous>, transform_indices = @transform_5, window_bounds = array<i64: 32, 64>}, {pipeline_mode = #tpu.pipeline_mode<synchronous>, transform_indices = @transform_6, window_bounds = array<i64: 1, 64>}, {pipeline_mode = #tpu.pipeline_mode<synchronous>, transform_indices = @transform_7, window_bounds = array<i64: 8, 2, 64>}]} {
    %c0_i32 = arith.constant 0 : i32
    %0 = arith.cmpi eq, %arg0, %c0_i32 : i32
    %1 = arith.extui %0 : i1 to i32
    %c0_i32_0 = arith.constant 0 : i32
    %2 = arith.cmpi ne, %1, %c0_i32_0 : i32
    scf.if %2 {
      %cst_36 = arith.constant 0.000000e+00 : f32
      %68 = vector.broadcast %cst_36 : f32 to vector<2x32xf32>
      %c0_37 = arith.constant 0 : index
      %c0_38 = arith.constant 0 : index
      %69 = vector.load %arg9[%c0_37, %c0_38] : memref<2x32xf32, #tpu.memory_space<vmem>>, vector<2x32xf32>
      tpu.vector_store %arg9[%c0_37, %c0_38], %68 {strides = array<i32>} : memref<2x32xf32, #tpu.memory_space<vmem>>, vector<2x32xf32>,
      %cst_39 = arith.constant 0.000000e+00 : f32
      %70 = vector.broadcast %cst_39 : f32 to vector<2x32xf32>
      %c0_40 = arith.constant 0 : index
      %c0_41 = arith.constant 0 : index
      %71 = vector.load %arg11[%c0_40, %c0_41] : memref<2x32xf32, #tpu.memory_space<vmem>>, vector<2x32xf32>
      tpu.vector_store %arg11[%c0_40, %c0_41], %70 {strides = array<i32>} : memref<2x32xf32, #tpu.memory_space<vmem>>, vector<2x32xf32>,
      %cst_42 = arith.constant 0.000000e+00 : f32
      %72 = vector.broadcast %cst_42 : f32 to vector<2x32xf32>
      %c0_43 = arith.constant 0 : index
      %c0_44 = arith.constant 0 : index
      %73 = vector.load %arg10[%c0_43, %c0_44] : memref<2x32xf32, #tpu.memory_space<vmem>>, vector<2x32xf32>
      tpu.vector_store %arg10[%c0_43, %c0_44], %72 {strides = array<i32>} : memref<2x32xf32, #tpu.memory_space<vmem>>, vector<2x32xf32>,
      %cst_45 = arith.constant 0.000000e+00 : f32
      %74 = vector.broadcast %cst_45 : f32 to vector<2x32xf32>
      %c0_46 = arith.constant 0 : index
      %c0_47 = arith.constant 0 : index
      %75 = vector.load %arg12[%c0_46, %c0_47] : memref<2x32xf32, #tpu.memory_space<vmem>>, vector<2x32xf32>
      tpu.vector_store %arg12[%c0_46, %c0_47], %74 {strides = array<i32>} : memref<2x32xf32, #tpu.memory_space<vmem>>, vector<2x32xf32>,
    } else {
    }
    %3 = arith.index_cast %arg0 : i32 to index
    %c0 = arith.constant 0 : index
    %c0_1 = arith.constant 0 : index
    %4 = vector.load %arg1[%3, %c0, %c0_1] : memref<8x2x32xf32, #tpu.memory_space<vmem>>, vector<1x2x32xf32>
    %5 = vector.shape_cast %4 : vector<1x2x32xf32> to vector<2x32xf32>
    %c0_2 = arith.constant 0 : index
    %c0_3 = arith.constant 0 : index
    %6 = vector.load %arg9[%c0_2, %c0_3] : memref<2x32xf32, #tpu.memory_space<vmem>>, vector<2x32xf32>
    %c0_4 = arith.constant 0 : index
    %c0_5 = arith.constant 0 : index
    %7 = vector.load %arg11[%c0_4, %c0_5] : memref<2x32xf32, #tpu.memory_space<vmem>>, vector<2x32xf32>
    %8 = tpu.concatenate %5, %6 in 1 : vector<2x32xf32>, vector<2x32xf32> -> vector<2x64xf32>
    %9 = arith.truncf %8 : vector<2x64xf32> to vector<2x64xbf16>
    %c0_6 = arith.constant 0 : index
    %c0_7 = arith.constant 0 : index
    %10 = vector.load %arg2[%c0_6, %c0_7] : memref<64x128xbf16, #tpu.memory_space<vmem>>, vector<64x128xbf16>
    %cst = arith.constant dense<0.000000e+00> : vector<2x128xf32>
    %11 = tpu.matmul %9, %10, %cst {dimension_numbers = #tpu.dot_dimension_numbers<[1], [0], [0], [1], [0, 0, 1, 1], [], []>} : vector<2x64xbf16>, vector<64x128xbf16>, vector<2x128xf32> -> vector<2x128xf32>
    %c0_8 = arith.constant 0 : index
    %c0_9 = arith.constant 0 : index
    %12 = vector.load %arg4[%c0_8, %c0_9] : memref<1x128xf32, #tpu.memory_space<vmem>>, vector<1x128xf32>
    %13 = vector.broadcast %12 : vector<1x128xf32> to vector<2x128xf32>
    %14 = arith.addf %11, %13 : vector<2x128xf32>
    %15 = arith.negf %14 : vector<2x128xf32>
    %16 = math.exp %15 : vector<2x128xf32>
    %cst_10 = arith.constant 1.000000e+00 : f32
    %17 = vector.broadcast %cst_10 : f32 to vector<2x128xf32>
    %18 = arith.addf %17, %16 : vector<2x128xf32>
    %19 = arith.divf %17, %18 : vector<2x128xf32>
    %20 = math.tanh %14 : vector<2x128xf32>
    %21 = vector.extract_strided_slice %19 {offsets = [0, 0], sizes = [2, 32], strides = [1, 1]} : vector<2x128xf32> to vector<2x32xf32>
    %22 = vector.extract_strided_slice %19 {offsets = [0, 32], sizes = [2, 32], strides = [1, 1]} : vector<2x128xf32> to vector<2x32xf32>
    %23 = vector.extract_strided_slice %20 {offsets = [0, 64], sizes = [2, 32], strides = [1, 1]} : vector<2x128xf32> to vector<2x32xf32>
    %24 = vector.extract_strided_slice %19 {offsets = [0, 96], sizes = [2, 32], strides = [1, 1]} : vector<2x128xf32> to vector<2x32xf32>
    %25 = arith.mulf %22, %7 : vector<2x32xf32>
    %26 = arith.mulf %21, %23 : vector<2x32xf32>
    %27 = arith.addf %25, %26 : vector<2x32xf32>
    %28 = math.tanh %27 : vector<2x32xf32>
    %29 = arith.mulf %24, %28 : vector<2x32xf32>
    %c0_11 = arith.constant 0 : index
    %c0_12 = arith.constant 0 : index
    %30 = vector.load %arg11[%c0_11, %c0_12] : memref<2x32xf32, #tpu.memory_space<vmem>>, vector<2x32xf32>
    tpu.vector_store %arg11[%c0_11, %c0_12], %27 {strides = array<i32>} : memref<2x32xf32, #tpu.memory_space<vmem>>, vector<2x32xf32>,
    %c0_13 = arith.constant 0 : index
    %c0_14 = arith.constant 0 : index
    %31 = vector.load %arg9[%c0_13, %c0_14] : memref<2x32xf32, #tpu.memory_space<vmem>>, vector<2x32xf32>
    tpu.vector_store %arg9[%c0_13, %c0_14], %29 {strides = array<i32>} : memref<2x32xf32, #tpu.memory_space<vmem>>, vector<2x32xf32>,
    %c0_15 = arith.constant 0 : index
    %c0_16 = arith.constant 0 : index
    %32 = vector.load %arg10[%c0_15, %c0_16] : memref<2x32xf32, #tpu.memory_space<vmem>>, vector<2x32xf32>
    %c0_17 = arith.constant 0 : index
    %c0_18 = arith.constant 0 : index
    %33 = vector.load %arg12[%c0_17, %c0_18] : memref<2x32xf32, #tpu.memory_space<vmem>>, vector<2x32xf32>
    %34 = tpu.concatenate %29, %32 in 1 : vector<2x32xf32>, vector<2x32xf32> -> vector<2x64xf32>
    %35 = arith.truncf %34 : vector<2x64xf32> to vector<2x64xbf16>
    %c0_19 = arith.constant 0 : index
    %c0_20 = arith.constant 0 : index
    %36 = vector.load %arg3[%c0_19, %c0_20] : memref<64x128xbf16, #tpu.memory_space<vmem>>, vector<64x128xbf16>
    %cst_21 = arith.constant dense<0.000000e+00> : vector<2x128xf32>
    %37 = tpu.matmul %35, %36, %cst_21 {dimension_numbers = #tpu.dot_dimension_numbers<[1], [0], [0], [1], [0, 0, 1, 1], [], []>} : vector<2x64xbf16>, vector<64x128xbf16>, vector<2x128xf32> -> vector<2x128xf32>
    %c0_22 = arith.constant 0 : index
    %c0_23 = arith.constant 0 : index
    %38 = vector.load %arg5[%c0_22, %c0_23] : memref<1x128xf32, #tpu.memory_space<vmem>>, vector<1x128xf32>
    %39 = vector.broadcast %38 : vector<1x128xf32> to vector<2x128xf32>
    %40 = arith.addf %37, %39 : vector<2x128xf32>
    %41 = arith.negf %40 : vector<2x128xf32>
    %42 = math.exp %41 : vector<2x128xf32>
    %cst_24 = arith.constant 1.000000e+00 : f32
    %43 = vector.broadcast %cst_24 : f32 to vector<2x128xf32>
    %44 = arith.addf %43, %42 : vector<2x128xf32>
    %45 = arith.divf %43, %44 : vector<2x128xf32>
    %46 = math.tanh %40 : vector<2x128xf32>
    %47 = vector.extract_strided_slice %45 {offsets = [0, 0], sizes = [2, 32], strides = [1, 1]} : vector<2x128xf32> to vector<2x32xf32>
    %48 = vector.extract_strided_slice %45 {offsets = [0, 32], sizes = [2, 32], strides = [1, 1]} : vector<2x128xf32> to vector<2x32xf32>
    %49 = vector.extract_strided_slice %46 {offsets = [0, 64], sizes = [2, 32], strides = [1, 1]} : vector<2x128xf32> to vector<2x32xf32>
    %50 = vector.extract_strided_slice %45 {offsets = [0, 96], sizes = [2, 32], strides = [1, 1]} : vector<2x128xf32> to vector<2x32xf32>
    %51 = arith.mulf %48, %33 : vector<2x32xf32>
    %52 = arith.mulf %47, %49 : vector<2x32xf32>
    %53 = arith.addf %51, %52 : vector<2x32xf32>
    %54 = math.tanh %53 : vector<2x32xf32>
    %55 = arith.mulf %50, %54 : vector<2x32xf32>
    %c0_25 = arith.constant 0 : index
    %c0_26 = arith.constant 0 : index
    %56 = vector.load %arg12[%c0_25, %c0_26] : memref<2x32xf32, #tpu.memory_space<vmem>>, vector<2x32xf32>
    tpu.vector_store %arg12[%c0_25, %c0_26], %53 {strides = array<i32>} : memref<2x32xf32, #tpu.memory_space<vmem>>, vector<2x32xf32>,
    %c0_27 = arith.constant 0 : index
    %c0_28 = arith.constant 0 : index
    %57 = vector.load %arg10[%c0_27, %c0_28] : memref<2x32xf32, #tpu.memory_space<vmem>>, vector<2x32xf32>
    tpu.vector_store %arg10[%c0_27, %c0_28], %55 {strides = array<i32>} : memref<2x32xf32, #tpu.memory_space<vmem>>, vector<2x32xf32>,
    %58 = arith.truncf %55 : vector<2x32xf32> to vector<2x32xbf16>
    %c0_29 = arith.constant 0 : index
    %c0_30 = arith.constant 0 : index
    %59 = vector.load %arg6[%c0_29, %c0_30] : memref<32x64xbf16, #tpu.memory_space<vmem>>, vector<32x64xbf16>
    %cst_31 = arith.constant dense<0.000000e+00> : vector<2x64xf32>
    %60 = tpu.matmul %58, %59, %cst_31 {dimension_numbers = #tpu.dot_dimension_numbers<[1], [0], [0], [1], [0, 0, 1, 1], [], []>} : vector<2x32xbf16>, vector<32x64xbf16>, vector<2x64xf32> -> vector<2x64xf32>
    %c0_32 = arith.constant 0 : index
    %c0_33 = arith.constant 0 : index
    %61 = vector.load %arg7[%c0_32, %c0_33] : memref<1x64xf32, #tpu.memory_space<vmem>>, vector<1x64xf32>
    %62 = vector.broadcast %61 : vector<1x64xf32> to vector<2x64xf32>
    %63 = arith.addf %60, %62 : vector<2x64xf32>
    %64 = arith.index_cast %arg0 : i32 to index
    %c0_34 = arith.constant 0 : index
    %c0_35 = arith.constant 0 : index
    %65 = vector.load %arg8[%64, %c0_34, %c0_35] : memref<8x2x64xf32, #tpu.memory_space<vmem>>, vector<1x2x64xf32>
    %66 = vector.shape_cast %65 : vector<1x2x64xf32> to vector<2x64xf32>
    %67 = vector.shape_cast %63 : vector<2x64xf32> to vector<1x2x64xf32>
    tpu.vector_store %arg8[%64, %c0_34, %c0_35], %67 {strides = array<i32>} : memref<8x2x64xf32, #tpu.memory_space<vmem>>, vector<1x2x64xf32>,
    return
  }
  func.func @transform_0(%arg0: i32) -> (i32, i32, i32) {
    %c0_i32 = arith.constant 0 : i32
    %c0_i32_0 = arith.constant 0 : i32
    %c0_i32_1 = arith.constant 0 : i32
    %c0_i32_2 = arith.constant 0 : i32
    return %c0_i32, %c0_i32_0, %c0_i32_1 : i32, i32, i32
  }
  func.func @transform_1(%arg0: i32) -> (i32, i32) {
    %c0_i32 = arith.constant 0 : i32
    %c0_i32_0 = arith.constant 0 : i32
    %c0_i32_1 = arith.constant 0 : i32
    return %c0_i32, %c0_i32_0 : i32, i32
  }
  func.func @transform_2(%arg0: i32) -> (i32, i32) {
    %c0_i32 = arith.constant 0 : i32
    %c0_i32_0 = arith.constant 0 : i32
    %c0_i32_1 = arith.constant 0 : i32
    return %c0_i32, %c0_i32_0 : i32, i32
  }
  func.func @transform_3(%arg0: i32) -> (i32, i32) {
    %c0_i32 = arith.constant 0 : i32
    %c0_i32_0 = arith.constant 0 : i32
    %c0_i32_1 = arith.constant 0 : i32
    return %c0_i32, %c0_i32_0 : i32, i32
  }
  func.func @transform_4(%arg0: i32) -> (i32, i32) {
    %c0_i32 = arith.constant 0 : i32
    %c0_i32_0 = arith.constant 0 : i32
    %c0_i32_1 = arith.constant 0 : i32
    return %c0_i32, %c0_i32_0 : i32, i32
  }
  func.func @transform_5(%arg0: i32) -> (i32, i32) {
    %c0_i32 = arith.constant 0 : i32
    %c0_i32_0 = arith.constant 0 : i32
    %c0_i32_1 = arith.constant 0 : i32
    return %c0_i32, %c0_i32_0 : i32, i32
  }
  func.func @transform_6(%arg0: i32) -> (i32, i32) {
    %c0_i32 = arith.constant 0 : i32
    %c0_i32_0 = arith.constant 0 : i32
    %c0_i32_1 = arith.constant 0 : i32
    return %c0_i32, %c0_i32_0 : i32, i32
  }
  func.func @transform_7(%arg0: i32) -> (i32, i32, i32) {
    %c0_i32 = arith.constant 0 : i32
    %c0_i32_0 = arith.constant 0 : i32
    %c0_i32_1 = arith.constant 0 : i32
    %c0_i32_2 = arith.constant 0 : i32
    return %c0_i32, %c0_i32_0, %c0_i32_1 : i32, i32, i32
  }
}

</mosaic_0001>

<bundles_post_ra>
// kernel: lstm_enhanced_forward.1
= control target key start
LH: loop header
LB: loop body
LE: loop exit
PB: predicated region body
PF: predicated region fallthrough
CT: control target
= control target key end

     0   :  { %s773_s24 = smov 0   ;;  %s875_s0 = inlined_call_operand.vmem [shape: f32[8,2,32], index: 0, kind: input, shape index: {}]   ;;  %s876_s1 = inlined_call_operand.vmem [shape: bf16[64,128], index: 1, kind: input, shape index: {}]   ;;  %s877_s2 = inlined_call_operand.vmem [shape: bf16[64,128], index: 2, kind: input, shape index: {}]   ;;  %s878_s3 = inlined_call_operand.vmem [shape: f32[1,128], index: 3, kind: input, shape index: {}]   ;;  %s879_s4 = inlined_call_operand.vmem [shape: f32[1,128], index: 4, kind: input, shape index: {}]   ;;  %s880_s5 = inlined_call_operand.vmem [shape: bf16[32,64], index: 5, kind: input, shape index: {}]   ;;  %s881_s6 = inlined_call_operand.vmem [shape: f32[1,64], index: 6, kind: input, shape index: {}]   ;;  %s882_s7 = inlined_call_operand.vmem [shape: f32[8,2,64], index: 7, kind: output, shape index: {}]  }
   0x1 LB: > { %s609_s25 = sadd.s32 4294967295, %s725_s24   ;;  %p611_p0 = scmp.ge.s32.totalorder %s725_s24, 1  ;;  %s725_s24 = sphi %s773_s24, %s17_s24  }
   0x2   : > { %p222_p1 = scmp.lt.s32.totalorder %s725_s24, 9 }
   0x4   : > { %p223_p2 = pnand %p611_p0, %p222_p1 }
   0x5   : > { %p612_p3 = scmp.ne.s32.totalorder (!%p223_p2), %s609_s25, 0 }
   0x6   : > { %226 = sbr.rel (%p223_p2) target bundleno = 1764 (0x6e4), region = 48 }
   0xd   : > { %248 = sbr.rel (%p612_p3) target bundleno = 20 (0x14), region = 52  ;;  %vm249_vm0 = vcmask (!%p612_p3), 254976   ;;  %v727_v0 = vmov (!%p612_p3), 0.0  }
   0xe   : > { %250 = vst.msk [vmem:[#allocation2] sm:$0x3] (!%p612_p3), %vm249_vm0, %v727_v0  ;;  %251 = vst.msk [vmem:[#allocation4] sm:$0x3] (!%p612_p3), %vm249_vm0, %v727_v0 }
   0xf   : > { %252 = vst.msk [vmem:[#allocation3] sm:$0x3] (!%p612_p3), %vm249_vm0, %v727_v0  ;;  %253 = vst.msk [vmem:[#allocation5] sm:$0x3] (!%p612_p3), %vm249_vm0, %v727_v0 }
  0x14 PF: > { %s728_s26 = smov 32   ;;  %v729_v2 = vmov 0.0   ;;  %v693_v3 = vld [vmem:[%s876_s1] sm:$0xff]   ;;  %v694_v4 = vld [vmem:[%s876_s1 + $0x8] sm:$0xff]   ;;  %vm730_vm1 = vmmov 0   ;;  %v695_v5 = vld [vmem:[%s876_s1 + $0x10] sm:$0xff]  }
  0x15   : > { %v257_v1 = vld [vmem:[#allocation2] sm:$0x3]  ;;  %647 = vmatprep.subr.bf16.mxu0 %v729_v2  ;;  %659 = vmatprep.subr.bf16.mxu1 %v729_v2  ;;  %v258_v6 = vld [vmem:[#allocation4] sm:$0x3]  ;;  %v696_v7 = vld [vmem:[%s876_s1 + $0x18] sm:$0xff]   ;;  %s809_s12 = sshll.u32 %s609_s25, 1 }
  0x16   : > { %260 = vrot.lane.b32.xlu0 %v257_v1, %s728_s26  ;;  %648 = vmatpush3.bf16.msra.mxu0 %v693_v3  ;;  %s255_s15 = scalar_lea.vmem %s875_s0, %s809_s12  ;;  %vm263_vm2 = vcmask 261120   ;;  %vm305_vm3 = vcmask 523264   ;;  %v614_v12 = vld [vmem:[%s878_s3] ss:$0 sm:$0xff]  ;;  %s731_s18 = smov 64   ;;  %v698_v30 = vld [vmem:[%s877_s2 + $0x8] sm:$0xff]  }
  0x17   : > { %649 = vmatprep.subr.bf16.mxu0 %v729_v2  ;;  %655 = vmatprep.mubr.msk.bf16.mxu0 %vm730_vm1, %v729_v2  ;;  %v256_v8 = vld [vmem:[%s255_s15] sm:$0x3]  ;;  %v699_v31 = vld [vmem:[%s877_s2 + $0x10] sm:$0xff]   ;;  %v388_v33 = vld [vmem:[#allocation3] sm:$0x3]  ;;  %vm381_vm4 = vcmask 254976  }
  0x18   : > { %667 = vmatprep.mubr.msk.bf16.mxu1 %vm730_vm1, %v729_v2  ;;  %357 = vrot.lane.b32.xlu1 %v258_v6, %s728_s26  ;;  %v697_v29 = vld [vmem:[%s877_s2] sm:$0xff]   ;;  %v700_v34 = vld [vmem:[%s877_s2 + $0x18] sm:$0xff]   ;;  %v702_v60 = vld [vmem:[%s880_s5 + $0x8] sm:$0xff]   ;;  %s732_s13 = smov 96   ;;  %vm587_vm5 = vcmask 517120  }
  0x19   : > { %660 = vmatpush3.bf16.msra.mxu1 %v697_v29  ;;  %v389_v35 = vld [vmem:[#allocation5] sm:$0x3]  ;;  %v621_v42 = vld [vmem:[%s879_s4] ss:$0 sm:$0xff] }
  0x1a   : > { %650 = vmatpush3.bf16.msra.mxu0 %v694_v4  ;;  %661 = vmatprep.subr.bf16.mxu1 %v729_v2  ;;  %v701_v59 = vld [vmem:[%s880_s5] sm:$0xff]  }
  0x1b   : > { %651 = vmatprep.subr.bf16.mxu0 %v729_v2 }
  0x1d   : > { %662 = vmatpush3.bf16.msra.mxu1 %v698_v30 }
  0x1e   : > { %652 = vmatpush3.bf16.msra.mxu0 %v695_v5  ;;  %663 = vmatprep.subr.bf16.mxu1 %v729_v2  ;;  %v628_v5 = vld [vmem:[%s881_s6] ss:$0 sm:$0xff] }
  0x1f   : > { %653 = vmatprep.subr.bf16.mxu0 %v729_v2 }
  0x21   : > { %664 = vmatpush3.bf16.msra.mxu1 %v699_v31 }
  0x22   : > { %654 = vmatpush3.bf16.msra.mxu0 %v696_v7  ;;  %665 = vmatprep.subr.bf16.mxu1 %v729_v2 }
  0x23   : > { %671 = vmatprep.subr.bf16.mxu0 %v729_v2 }
  0x25   : > { %666 = vmatpush3.bf16.msra.mxu1 %v700_v34 }
  0x88   : > { %v261_v9 = vpop.permute.xlu0 %260 }
  0x89   : > { %v264_v10 = vsel %vm263_vm2, %v256_v8, %v261_v9 }
  0x8a   : > { %v265_v11 = vpack.c.bf16 %v264_v10, %v264_v10  ;;  %v358_v25 = vpop.permute.xlu1 %357 }
  0x8c   : > { %656 = vmatmul.mubr.msk.bf16.vlgmr.msra.gmra.mrb[0].mxu0 %vm305_vm3, %v265_v11 }
  0x8d   : > { %675 = vmatprep.mubr.msk.bf16.mxu0 %vm730_vm1, %v729_v2  ;;  %672 = vmatpush3.bf16.msra.mxu0 %v701_v59 }
  0x8e   : > { %673 = vmatprep.subr.bf16.mxu0 %v729_v2 }
  0x91   : > { %674 = vmatpush3.bf16.msra.mxu0 %v702_v60 }
 0x15f   : > { %v343_v13 = vpop.f32.mrb[0].mxu0 }
 0x160   : > { %v344_v14 = vadd.f32 %v614_v12, %v343_v13  ;;  %v657_v15 = vpop.f32.mrb[1].mxu0 }
 0x161   : > { %v346_v16 = vpop.f32.mrb[2].mxu0 }
 0x162   : > { %703 = vtanh.f32 %v344_v14  ;;  %v658_v17 = vpop.f32.mrb[3].mxu0  ;;  %v620_v19 = vmul.f32 -1.442695, %v344_v14 }
 0x164   : > { %705 = vpow2.f32 %v620_v19 }
 0x16c   : > { %v704_v18 = vpop.eup %703 }
 0x16d   : > { %362 = vrot.lane.b32.xlu0 %v704_v18, %s731_s18 }
 0x16e   : > { %v706_v20 = vpop.eup %705 }
 0x16f   : > { %v352_v21 = vadd.f32 1.0, %v706_v20 }
 0x171   : > { %707 = vrcp.f32 %v352_v21 }
 0x17b   : > { %v708_v22 = vpop.eup %707 }
 0x17c   : > { %v360_v26 = vmul.f32 %v708_v22, %v358_v25 }
 0x1df   : > { %v363_v23 = vpop.permute.xlu0 %362 }
 0x1e0   : > { %v365_v24 = vmul.f32 %v708_v22, %v363_v23 }
 0x1e2   : > { %367 = vrot.lane.b32.xlu1 %v365_v24, %s728_s26 }
 0x254   : > { %v368_v27 = vpop.permute.xlu1 %367 }
 0x255   : > { %v370_v28 = vadd.f32 %v368_v27, %v360_v26 }
 0x257   : > { %709 = vtanh.f32 %v370_v28 }
 0x261   : > { %v710_v32 = vpop.eup %709 }
 0x262   : > { %373 = vrot.lane.b32.xlu0 %v710_v32, %s731_s18 }
 0x266   : > { %391 = vrot.lane.b32.xlu0 %v388_v33, %s728_s26 }
 0x26a   : > { %486 = vrot.lane.b32.xlu0 %v389_v35, %s728_s26 }
 0x2d4   : > { %v374_v36 = vpop.permute.xlu0 %373 }
 0x2d5   : > { %v376_v37 = vmul.f32 %v708_v22, %v374_v36 }
 0x2d7   : > { %384 = vrot.lane.b32.xlu1 %v376_v37, %s728_s26 }
 0x2d8   : > { %v392_v38 = vpop.permute.xlu0 %391 }
 0x2dc   : > { %v487_v55 = vpop.permute.xlu0 %486 }
 0x349   : > { %v385_v39 = vpop.permute.xlu1 %384 }
 0x34a   : > { %387 = vst.msk [vmem:[#allocation2] sm:$0x3] %vm381_vm4, %v385_v39  ;;  %v394_v40 = vsel %vm263_vm2, %v385_v39, %v392_v38 }
 0x34b   : > { %v395_v41 = vpack.c.bf16 %v394_v40, %v394_v40 }
 0x34d   : > { %668 = vmatmul.mubr.msk.bf16.vlgmr.msra.gmra.mrb[0].mxu1 %vm305_vm3, %v395_v41 }
 0x420   : > { %v472_v43 = vpop.f32.mrb[0].mxu1 }
 0x421   : > { %v473_v44 = vadd.f32 %v621_v42, %v472_v43  ;;  %v669_v45 = vpop.f32.mrb[1].mxu1 }
 0x422   : > { %v475_v46 = vpop.f32.mrb[2].mxu1 }
 0x423   : > { %711 = vtanh.f32 %v473_v44  ;;  %v670_v47 = vpop.f32.mrb[3].mxu1  ;;  %v627_v49 = vmul.f32 -1.442695, %v473_v44 }
 0x425   : > { %713 = vpow2.f32 %v627_v49 }
 0x42d   : > { %v712_v48 = vpop.eup %711 }
 0x42e   : > { %491 = vrot.lane.b32.xlu1 %v712_v48, %s731_s18 }
 0x42f   : > { %v714_v50 = vpop.eup %713 }
 0x430   : > { %v481_v51 = vadd.f32 1.0, %v714_v50 }
 0x432   : > { %715 = vrcp.f32 %v481_v51 }
 0x43c   : > { %v716_v52 = vpop.eup %715 }
 0x43d   : > { %v489_v56 = vmul.f32 %v716_v52, %v487_v55 }
 0x4a0   : > { %v492_v53 = vpop.permute.xlu1 %491 }
 0x4a1   : > { %v494_v54 = vmul.f32 %v716_v52, %v492_v53 }
 0x4a3   : > { %496 = vrot.lane.b32.xlu1 %v494_v54, %s728_s26 }
 0x515   : > { %v497_v57 = vpop.permute.xlu1 %496 }
 0x516   : > { %v499_v58 = vadd.f32 %v497_v57, %v489_v56 }
 0x518   : > { %717 = vtanh.f32 %v499_v58 }
 0x522   : > { %v718_v61 = vpop.eup %717 }
 0x523   : > { %502 = vrot.lane.b32.xlu0 %v718_v61, %s731_s18  ;;  %s586_s18 = scalar_lea.vmem %s882_s7, %s809_s12 }
 0x527   : > { %378 = vrot.lane.b32.xlu0 %v370_v28, %s732_s13 }
 0x595   : > { %v503_v62 = vpop.permute.xlu0 %502 }
 0x596   : > { %v505_v63 = vmul.f32 %v716_v52, %v503_v62 }
 0x598   : > { %v516_v0 = vpack.c.bf16 %v505_v63, %v505_v63  ;;  %512 = vrot.lane.b32.xlu0 %v505_v63, %s728_s26 }
 0x599   : > { %v379_v1 = vpop.permute.xlu0 %378 }
 0x59a   : > { %382 = vst.msk [vmem:[#allocation4] sm:$0x3] %vm381_vm4, %v379_v1  ;;  %529 = vrot.lane.b32.xlu1 %v516_v0, %s728_s26 }
 0x59e   : > { %507 = vrot.lane.b32.xlu1 %v499_v58, %s732_s13 }
 0x60a   : > { %v513_v3 = vpop.permute.xlu0 %512 }
 0x60b   : > { %515 = vst.msk [vmem:[#allocation3] sm:$0x3] %vm381_vm4, %v513_v3 }
 0x60c   : > { %v530_v2 = vpop.permute.xlu1 %529 }
 0x60d   : > { %676 = vmatmul.mubr.msk.bf16.vlgmr.msra.gmra.mrb[4].mxu0 %vm263_vm2, %v530_v2 }
 0x610   : > { %v508_v4 = vpop.permute.xlu1 %507 }
 0x611   : > { %510 = vst.msk [vmem:[#allocation5] sm:$0x3] %vm381_vm4, %v508_v4 }
 0x6e0   : > { %v580_v6 = vpop.f32.mrb[4].mxu0 }
 0x6e1   : > { %v581_v7 = vadd.f32 %v628_v5, %v580_v6  ;;  %v677_v8 = vpop.f32.mrb[5].mxu0 }
 0x6e2   : > { %v583_v9 = vpop.f32.mrb[6].mxu0 }
 0x6e3   : > { %588 = vst.msk [vmem:[%s586_s18] sm:$0x3] %vm587_vm5, %v581_v7  ;;  %v678_v10 = vpop.f32.mrb[7].mxu0 }
 0x6e4 PF: > { %s17_s24 = sadd.s32 1, %s725_s24  }
 0x6e5   : > { %p14_p4 = scmp.ge.s32.totalorder %s17_s24, 10  }
 0x6e7   :  { %16 = sbr.rel (!%p14_p4) target bundleno = 1 (0x1), region = 77 }

</bundles_post_ra>
